<compile_context>
chip_gen: v7x
topology: tpu7x:2x2x1
jax: 0.10.0
libtpu: 0.0.40
codegen_flags: <defaults>
</compile_context>

<pallas_src>
import functools

import jax
import jax.numpy as jnp
from jax.experimental import pallas as pl
from jax.experimental.pallas import tpu as pltpu


def _round_up(x, m):
    return ((x + m - 1) // m) * m


def _gate_combine_kernel(d_ref, f_ref, a_ref, q_ref, v_ref, o_ref, *, use_mxu):
    """
    d_ref : SMEM (3,) f32   fused scalar offsets d = b @ u + c  (order: f, a, q)
    f/a/q : VMEM (bm, H)    batch row tiles (H = full logical hidden dim, unpadded)
    v_ref : VMEM f32        use_mxu: (H, 128) with cols 0..2 = fused vectors W@u
                            else   : (8, H)   with rows 0..2 = fused vectors W@u
    o_ref : VMEM (bm, H)
    """
    f = f_ref[...].astype(jnp.float32)
    a = a_ref[...].astype(jnp.float32)
    q = q_ref[...].astype(jnp.float32)
    v = v_ref[...]

    if use_mxu:
        def logit(x, g):
            # (bm, H) @ (H, 128) on the otherwise-idle MXU; take gate g's column.
            dots = jnp.dot(x, v, preferred_element_type=jnp.float32)
            return dots[:, g:g + 1]
    else:
        def logit(x, g):
            # VPU multiply + XLU lane-reduce (amortizes for large H).
            return jnp.sum(x * v[g:g + 1, :], axis=-1, keepdims=True)

    f_g = jax.nn.sigmoid(logit(f + q, 0) + d_ref[0])
    a_g = jax.nn.sigmoid(logit(a + q, 1) + d_ref[1])
    q_g = jax.nn.sigmoid(logit(q, 2) + d_ref[2])

    o_ref[...] = (f_g * f + a_g * a + q_g * q).astype(o_ref.dtype)


def _fold_params(params):
    """Fold each gate's two linears (valid because dropout = identity in eval):
       sigmoid((x @ W + b) @ u + c) == sigmoid(x @ (W@u) + (b@u + c))."""
    def fold(w, b, u, c):
        v = (w @ u)[:, 0].astype(jnp.float32)             # [H]
        d = (b @ u + c).reshape(()).astype(jnp.float32)   # scalar
        return v, d

    vf, df = fold(params["wf"], params["bf"], params["uf"], params["cf"])
    va, da = fold(params["wa"], params["ba"], params["ua"], params["ca"])
    vq, dq = fold(params["wq"], params["bq"], params["uq"], params["cq"])
    return (vf, va, vq), (df, da, dq)


def gate_combine(f, a, q, params, *, bm=None, allow_fast_path=True):
    """Pallas wrapper. f, a, q: [B, H]. Returns [B, H]."""
    B, H = f.shape
    dtype = f.dtype
    itemsize = jnp.dtype(dtype).itemsize
    sub = 8 if itemsize >= 4 else 16          # sublane tile (f32: 8, bf16: 16)
    h_phys = _round_up(H, 128)                # physical lane width of one row

    (vf, va, vq), (df, da, dq) = _fold_params(params)
    d_all = jnp.stack([df, da, dq])           # (3,) f32 -> SMEM

    # --- Tiny-shape fast path: pallas_call fixed cost dominates below ~256 KiB. ---
    if allow_fast_path and 4 * B * H * itemsize < 256 * 1024:
        f32 = lambda x: x.astype(jnp.float32)
        f_g = jax.nn.sigmoid((f32(f) + f32(q)) @ vf + df)[:, None]
        a_g = jax.nn.sigmoid((f32(a) + f32(q)) @ va + da)[:, None]
        q_g = jax.nn.sigmoid(f32(q) @ vq + dq)[:, None]
        return (f_g * f32(f) + a_g * f32(a) + q_g * f32(q)).astype(dtype)

    # --- Gate-logit path: MXU for narrow H, VPU/XLU reduce for wide H. ---
    use_mxu = h_phys <= 512
    if use_mxu:
        v_all = (jnp.zeros((H, 128), jnp.float32)
                 .at[:, 0].set(vf).at[:, 1].set(va).at[:, 2].set(vq))
        v_bytes = 2 * _round_up(H, 8) * 128 * 4
        v_spec = pl.BlockSpec((H, 128), lambda i: (0, 0))
    else:
        v_all = (jnp.zeros((8, H), jnp.float32)
                 .at[0, :].set(vf).at[1, :].set(va).at[2, :].set(vq))
        v_bytes = 2 * 8 * h_phys * 4
        v_spec = pl.BlockSpec((8, H), lambda i: (0, 0))

    # --- Batch tile: budget double-buffered f/a/q/out (+ resident V) vs ~24 MiB. ---
    if bm is None:
        budget = 24 * 1024 * 1024 - v_bytes
        bm = budget // (4 * 2 * h_phys * itemsize)
        bm = min(4096, bm)
    bm = min(bm, _round_up(B, sub))           # don't blow up small batches
    bm = max(sub, (bm // sub) * sub)
    # v7x megacore: make sure the "parallel" batch axis has >= 2 steps so both
    # TensorCores get a share of the HBM-bound work.
    if B >= 128 and pl.cdiv(B, bm) == 1:
        bm = _round_up(pl.cdiv(B, 2), sub)

    grid = (pl.cdiv(B, bm),)
    row_spec = pl.BlockSpec((bm, H), lambda i: (i, 0))

    # tile_bytes already includes double-buffering; just add headroom.
    tile_bytes = 4 * 2 * bm * h_phys * itemsize + v_bytes
    vmem_limit = int(min(tile_bytes + 4 * 1024 * 1024, 64 * 1024 * 1024))

    kernel = functools.partial(_gate_combine_kernel, use_mxu=use_mxu)

    return pl.pallas_call(
        kernel,
        out_shape=jax.ShapeDtypeStruct((B, H), dtype),
        grid_spec=pltpu.PrefetchScalarGridSpec(
            num_scalar_prefetch=0,
            grid=grid,
            in_specs=[
                pl.BlockSpec(memory_space=pltpu.MemorySpace.SMEM),  # d scalars (3,)
                row_spec,                                           # f
                row_spec,                                           # a
                row_spec,                                           # q
                v_spec,                                             # fused gate vectors
            ],
            out_specs=row_spec,
        ),
        compiler_params=pltpu.CompilerParams(
            dimension_semantics=("parallel",),   # shard batch across TCs on v7x
            vmem_limit_bytes=vmem_limit,
        ),
    )(d_all, f, a, q, v_all)


def init_params(key, hidden, mid):
    """Deterministic synthetic parameters (same shapes as the PyTorch module).

    Linear weights are stored as [in, out] (i.e. W.T of nn.Linear's [out, in]).
    """
    ks = jax.random.split(key, 12)
    scale_h = 1.0 / jnp.sqrt(hidden)
    scale_m = 1.0 / jnp.sqrt(mid)

    def lin(kw, kb, in_dim, out_dim, scale):
        w = jax.random.uniform(kw, (in_dim, out_dim), jnp.float32, -scale, scale)
        b = jax.random.uniform(kb, (1, out_dim), jnp.float32, -scale, scale)
        return w, b

    wf, bf = lin(ks[0], ks[1], hidden, mid, scale_h)   # f_proj
    uf, cf = lin(ks[2], ks[3], mid, 1, scale_m)        # f_att
    wa, ba = lin(ks[4], ks[5], hidden, mid, scale_h)   # a_proj
    ua, ca = lin(ks[6], ks[7], mid, 1, scale_m)        # a_att
    wq, bq = lin(ks[8], ks[9], hidden, mid, scale_h)   # q_proj
    uq, cq = lin(ks[10], ks[11], mid, 1, scale_m)      # q_att
    return dict(wf=wf, bf=bf, uf=uf, cf=cf,
                wa=wa, ba=ba, ua=ua, ca=ca,
                wq=wq, bq=bq, uq=uq, cq=cq)


def gate_combine_ref(f, a, q, p):
    """Pure-JAX reference in the original (two-matmul, eval-mode) form."""
    def gate(x, w, b, u, c):
        return jax.nn.sigmoid((x @ w + b) @ u + c)
    f_g = gate(f + q, p["wf"], p["bf"], p["uf"], p["cf"])
    a_g = gate(a + q, p["wa"], p["ba"], p["ua"], p["ca"])
    q_g = gate(q,     p["wq"], p["bq"], p["uq"], p["cq"])
    return f_g * f + a_g * a + q_g * q


if __name__ == "__main__":
    def make_case(k, B, H, M):
        kf, ka, kq, kp = jax.random.split(k, 4)
        f = jax.random.normal(kf, (B, H), jnp.float32)
        a = jax.random.normal(ka, (B, H), jnp.float32)
        q = jax.random.normal(kq, (B, H), jnp.float32)
        p = init_params(kp, H, M)
        return f, a, q, p

    # The fold reassociates the f32 reduction vs the two-matmul reference, so
    # keep tolerances loose-ish (1e-4) rather than tightening them.
    tol = dict(atol=1e-4, rtol=1e-4)

    # Case 1: tiny module-like shapes (B=8, H=32, M=16), kernel path forced (MXU dots).
    f1, a1, q1, p1 = make_case(jax.random.PRNGKey(0), 8, 32, 16)
    o1 = jax.block_until_ready(gate_combine(f1, a1, q1, p1, allow_fast_path=False))
    r1 = gate_combine_ref(f1, a1, q1, p1)
    assert o1.shape == (8, 32)
    assert jnp.allclose(o1, r1, **tol), "mismatch vs reference (case 1)"

    # Case 2: non-128-aligned H, partial last batch block, multi-step grid.
    f2, a2, q2, p2 = make_case(jax.random.PRNGKey(1), 50, 200, 24)
    o2 = jax.block_until_ready(gate_combine(f2, a2, q2, p2, bm=16, allow_fast_path=False))
    r2 = gate_combine_ref(f2, a2, q2, p2)
    assert o2.shape == (50, 200)
    assert jnp.allclose(o2, r2, **tol), "mismatch vs reference (case 2)"

    # Case 3: wide H -> VPU/XLU lane-reduce path.
    f3, a3, q3, p3 = make_case(jax.random.PRNGKey(2), 32, 640, 48)
    o3 = jax.block_until_ready(gate_combine(f3, a3, q3, p3, allow_fast_path=False))
    r3 = gate_combine_ref(f3, a3, q3, p3)
    assert o3.shape == (32, 640)
    assert jnp.allclose(o3, r3, **tol), "mismatch vs reference (case 3)"

    # Case 4: tiny-shape fast path (pure-XLA dispatch).
    f4, a4, q4, p4 = make_case(jax.random.PRNGKey(3), 4, 32, 16)
    o4 = jax.block_until_ready(gate_combine(f4, a4, q4, p4))
    r4 = gate_combine_ref(f4, a4, q4, p4)
    assert jnp.allclose(o4, r4, **tol), "mismatch vs reference (case 4)"

    # TODO(synk): training-mode dropout inside the projections is not implemented;
    # the W@u fold (and this kernel) covers the eval-mode forward pass only.
    print("KERNEL_OK")
</pallas_src>

<mosaic_0001>
module attributes {stable_mosaic.version = 11 : i64} {
  func.func @_gate_combine_kernel(%arg0: i32, %arg1: memref<3xf32, #tpu.memory_space<smem>>, %arg2: memref<8x32xf32, #tpu.memory_space<vmem>>, %arg3: memref<8x32xf32, #tpu.memory_space<vmem>>, %arg4: memref<8x32xf32, #tpu.memory_space<vmem>>, %arg5: memref<32x128xf32, #tpu.memory_space<vmem>>, %arg6: memref<8x32xf32, #tpu.memory_space<vmem>>) attributes {dimension_semantics = [#tpu.dimension_semantics<parallel>], iteration_bounds = array<i64: 1>, scalar_prefetch = 0 : i64, scratch_operands = 0 : i64, tpu.core_type = #tpu.core_type<tc>, window_params = [{transform_indices = @transform_0, window_bounds = array<i64: 3>}, {transform_indices = @transform_1, window_bounds = array<i64: 8, 32>}, {transform_indices = @transform_2, window_bounds = array<i64: 8, 32>}, {transform_indices = @transform_3, window_bounds = array<i64: 8, 32>}, {pipeline_mode = #tpu.pipeline_mode<synchronous>, transform_indices = @transform_4, window_bounds = array<i64: 32, 128>}, {transform_indices = @transform_5, window_bounds = array<i64: 8, 32>}]} {
    %c0 = arith.constant 0 : index
    %c0_0 = arith.constant 0 : index
    %0 = vector.load %arg2[%c0, %c0_0] : memref<8x32xf32, #tpu.memory_space<vmem>>, vector<8x32xf32>
    %c0_1 = arith.constant 0 : index
    %c0_2 = arith.constant 0 : index
    %1 = vector.load %arg3[%c0_1, %c0_2] : memref<8x32xf32, #tpu.memory_space<vmem>>, vector<8x32xf32>
    %c0_3 = arith.constant 0 : index
    %c0_4 = arith.constant 0 : index
    %2 = vector.load %arg4[%c0_3, %c0_4] : memref<8x32xf32, #tpu.memory_space<vmem>>, vector<8x32xf32>
    %c0_5 = arith.constant 0 : index
    %c0_6 = arith.constant 0 : index
    %3 = vector.load %arg5[%c0_5, %c0_6] : memref<32x128xf32, #tpu.memory_space<vmem>>, vector<32x128xf32>
    %4 = arith.addf %0, %2 : vector<8x32xf32>
    %cst = arith.constant dense<0.000000e+00> : vector<8x128xf32>
    %5 = tpu.matmul %4, %3, %cst {dimension_numbers = #tpu.dot_dimension_numbers<[1], [0], [0], [1], [0, 0, 1, 1], [], []>} : vector<8x32xf32>, vector<32x128xf32>, vector<8x128xf32> -> vector<8x128xf32>
    %6 = vector.extract_strided_slice %5 {offsets = [0, 0], sizes = [8, 1], strides = [1, 1]} : vector<8x128xf32> to vector<8x1xf32>
    %c0_7 = arith.constant 0 : index
    %7 = memref.load %arg1[%c0_7] : memref<3xf32, #tpu.memory_space<smem>>
    %8 = vector.broadcast %7 : f32 to vector<8x1xf32>
    %9 = arith.addf %6, %8 : vector<8x1xf32>
    %10 = arith.negf %9 : vector<8x1xf32>
    %11 = math.exp %10 : vector<8x1xf32>
    %cst_8 = arith.constant 1.000000e+00 : f32
    %12 = vector.broadcast %cst_8 : f32 to vector<8x1xf32>
    %13 = arith.addf %12, %11 : vector<8x1xf32>
    %14 = arith.divf %12, %13 : vector<8x1xf32>
    %15 = arith.addf %1, %2 : vector<8x32xf32>
    %cst_9 = arith.constant dense<0.000000e+00> : vector<8x128xf32>
    %16 = tpu.matmul %15, %3, %cst_9 {dimension_numbers = #tpu.dot_dimension_numbers<[1], [0], [0], [1], [0, 0, 1, 1], [], []>} : vector<8x32xf32>, vector<32x128xf32>, vector<8x128xf32> -> vector<8x128xf32>
    %17 = vector.extract_strided_slice %16 {offsets = [0, 1], sizes = [8, 1], strides = [1, 1]} : vector<8x128xf32> to vector<8x1xf32>
    %c1 = arith.constant 1 : index
    %18 = memref.load %arg1[%c1] : memref<3xf32, #tpu.memory_space<smem>>
    %19 = vector.broadcast %18 : f32 to vector<8x1xf32>
    %20 = arith.addf %17, %19 : vector<8x1xf32>
    %21 = arith.negf %20 : vector<8x1xf32>
    %22 = math.exp %21 : vector<8x1xf32>
    %cst_10 = arith.constant 1.000000e+00 : f32
    %23 = vector.broadcast %cst_10 : f32 to vector<8x1xf32>
    %24 = arith.addf %23, %22 : vector<8x1xf32>
    %25 = arith.divf %23, %24 : vector<8x1xf32>
    %cst_11 = arith.constant dense<0.000000e+00> : vector<8x128xf32>
    %26 = tpu.matmul %2, %3, %cst_11 {dimension_numbers = #tpu.dot_dimension_numbers<[1], [0], [0], [1], [0, 0, 1, 1], [], []>} : vector<8x32xf32>, vector<32x128xf32>, vector<8x128xf32> -> vector<8x128xf32>
    %27 = vector.extract_strided_slice %26 {offsets = [0, 2], sizes = [8, 1], strides = [1, 1]} : vector<8x128xf32> to vector<8x1xf32>
    %c2 = arith.constant 2 : index
    %28 = memref.load %arg1[%c2] : memref<3xf32, #tpu.memory_space<smem>>
    %29 = vector.broadcast %28 : f32 to vector<8x1xf32>
    %30 = arith.addf %27, %29 : vector<8x1xf32>
    %31 = arith.negf %30 : vector<8x1xf32>
    %32 = math.exp %31 : vector<8x1xf32>
    %cst_12 = arith.constant 1.000000e+00 : f32
    %33 = vector.broadcast %cst_12 : f32 to vector<8x1xf32>
    %34 = arith.addf %33, %32 : vector<8x1xf32>
    %35 = arith.divf %33, %34 : vector<8x1xf32>
    %36 = vector.broadcast %14 : vector<8x1xf32> to vector<8x32xf32>
    %37 = arith.mulf %36, %0 : vector<8x32xf32>
    %38 = vector.broadcast %25 : vector<8x1xf32> to vector<8x32xf32>
    %39 = arith.mulf %38, %1 : vector<8x32xf32>
    %40 = arith.addf %37, %39 : vector<8x32xf32>
    %41 = vector.broadcast %35 : vector<8x1xf32> to vector<8x32xf32>
    %42 = arith.mulf %41, %2 : vector<8x32xf32>
    %43 = arith.addf %40, %42 : vector<8x32xf32>
    %c0_13 = arith.constant 0 : index
    %c0_14 = arith.constant 0 : index
    %44 = vector.load %arg6[%c0_13, %c0_14] : memref<8x32xf32, #tpu.memory_space<vmem>>, vector<8x32xf32>
    tpu.vector_store %arg6[%c0_13, %c0_14], %43 {strides = array<i32>} : memref<8x32xf32, #tpu.memory_space<vmem>>, vector<8x32xf32>,
    return
  }
  func.func @transform_0(%arg0: i32) -> i32 {
    %c0_i32 = arith.constant 0 : i32
    %c0_i32_0 = arith.constant 0 : i32
    return %c0_i32 : i32
  }
  func.func @transform_1(%arg0: i32) -> (i32, i32) {
    %c0_i32 = arith.constant 0 : i32
    %c0_i32_0 = arith.constant 0 : i32
    return %arg0, %c0_i32 : i32, i32
  }
  func.func @transform_2(%arg0: i32) -> (i32, i32) {
    %c0_i32 = arith.constant 0 : i32
    %c0_i32_0 = arith.constant 0 : i32
    return %arg0, %c0_i32 : i32, i32
  }
  func.func @transform_3(%arg0: i32) -> (i32, i32) {
    %c0_i32 = arith.constant 0 : i32
    %c0_i32_0 = arith.constant 0 : i32
    return %arg0, %c0_i32 : i32, i32
  }
  func.func @transform_4(%arg0: i32) -> (i32, i32) {
    %c0_i32 = arith.constant 0 : i32
    %c0_i32_0 = arith.constant 0 : i32
    %c0_i32_1 = arith.constant 0 : i32
    return %c0_i32, %c0_i32_0 : i32, i32
  }
  func.func @transform_5(%arg0: i32) -> (i32, i32) {
    %c0_i32 = arith.constant 0 : i32
    %c0_i32_0 = arith.constant 0 : i32
    return %arg0, %c0_i32 : i32, i32
  }
}

</mosaic_0001>

<bundles_post_ra>
// kernel: tpu_custom_call.1
= control target key start
LH: loop header
LB: loop body
LE: loop exit
PB: predicated region body
PF: predicated region fallthrough
CT: control target
= control target key end

     0   :  { %10 = vsyncpa [#allocation5], 0  ;;  %s695_s0 = inlined_call_operand.hbm [shape: f32[3], index: 0, kind: input, shape index: {}]   ;;  %s696_s1 = inlined_call_operand.hbm [shape: f32[8,32], index: 1, kind: input, shape index: {}]   ;;  %s697_s2 = inlined_call_operand.hbm [shape: f32[8,32], index: 2, kind: input, shape index: {}]   ;;  %s698_s3 = inlined_call_operand.vmem [shape: f32[8,32], index: 3, kind: input, shape index: {}]   ;;  %s699_s4 = inlined_call_operand.hbm [shape: f32[32,128], index: 4, kind: input, shape index: {}]   ;;  %s700_s5 = inlined_call_operand.hbm [shape: f32[8,32], index: 5, kind: output, shape index: {}]  }
   0x1   :  { %11 = vsyncpa [#allocation3], 0 }
   0x2   :  { %12 = vsyncpa [#allocation8], 0 }
   0x3   :  { %13 = vsyncpa [#allocation4], 0  ;;  %s572_s18 = smov [#allocation7]   ;;  %s573_s20 = smov [#allocation6]  }
   0x4   :  { %s38_s19 = sshll.u32 %s572_s18, 4  ;;  %s28_s21 = sshll.u32 %s573_s20, 4  ;;  %s39_s19 = int_to_ptr.vmem [resolvable:$true] %s38_s19  ;;  %s29_s21 = int_to_ptr.vmem [resolvable:$true] %s28_s21 }
   0x5   :  { %s466_s24 = scalar_lea.hbm %s697_s2, 128 }
   0x6   :  { %p467_p0 = scmp.ne.s32.totalorder %s697_s2, %s466_s24  ;;  %p470_p1 = scmp.lt.u32.totalorder %s466_s24, %s697_s2 }
   0x8   :  { %p472_p2 = pnand %p470_p1, %p467_p0 }
   0xa   :  { %475 = shalt.err (!%p472_p2)
}
   0xb   :  { %s476_s29 = scalar_lea.vmem %s39_s19, 128  ;;  %p481_p4 = scmp.lt.s32.totalorder %s39_s19, %s39_s19 }
   0xc   :  { %p477_p3 = scmp.ne.s32.totalorder %s39_s19, %s476_s29  ;;  %p482_p5 = scmp.lt.s32.totalorder %s476_s29, %s476_s29 }
   0xe   :  { %p483_p6 = por %p482_p5, %p481_p4 }
  0x10   :  { %p484_p7 = pnand %p483_p6, %p477_p3 }
  0x12   :  { %487 = shalt.err (!%p484_p7)
}
  0x13   :  { %41 = dma.hbm_to_vmem [thread:$0]  %s697_s2, 128, %s39_s19, [#allocation8]  }
  0x14   :  { %s488_s9 = scalar_lea.hbm %s695_s0, 16 }
  0x15   :  { %p489_p8 = scmp.ne.s32.totalorder %s695_s0, %s488_s9  ;;  %p492_p9 = scmp.lt.u32.totalorder %s488_s9, %s695_s0 }
  0x17   :  { %p494_p10 = pnand %p492_p9, %p489_p8 }
  0x19   :  { %497 = shalt.err (!%p494_p10)
}
  0x1a   :  { %s574_s14 = smov [#allocation2]   ;;  %s498_s18 = scalar_lea.hbm %s696_s1, 128 }
  0x1b   :  { %21 = dma.hbm_to_smem %s695_s0, 16, %s574_s14, [#allocation5]  }
  0x1c   :  { %p499_p11 = scmp.ne.s32.totalorder %s696_s1, %s498_s18  ;;  %p502_p12 = scmp.lt.u32.totalorder %s498_s18, %s696_s1 }
  0x1e   :  { %p504_p13 = pnand %p502_p12, %p499_p11 }
  0x20   :  { %507 = shalt.err (!%p504_p13)
}
  0x21   :  { %s508_s24 = scalar_lea.vmem %s29_s21, 128  ;;  %p513_p1 = scmp.lt.s32.totalorder %s29_s21, %s29_s21 }
  0x22   :  { %p509_p0 = scmp.ne.s32.totalorder %s29_s21, %s508_s24  ;;  %p514_p2 = scmp.lt.s32.totalorder %s508_s24, %s508_s24 }
  0x24   :  { %p515_p3 = por %p514_p2, %p513_p1 }
  0x26   :  { %p516_p4 = pnand %p515_p3, %p509_p0 }
  0x28   :  { %519 = shalt.err (!%p516_p4)
}
  0x29   :  { %31 = dma.hbm_to_vmem [thread:$0]  %s696_s1, 128, %s29_s21, [#allocation3]  }
  0x2a   :  { %s575_s26 = smov [#allocation9]   ;;  %s520_s30 = scalar_lea.hbm %s699_s4, 512 }
  0x2b   :  { %s49_s27 = sshll.u32 %s575_s26, 4  ;;  %p521_p5 = scmp.ne.s32.totalorder %s699_s4, %s520_s30  ;;  %s50_s27 = int_to_ptr.vmem [resolvable:$true] %s49_s27 }
  0x2c   :  { %p524_p6 = scmp.lt.u32.totalorder %s520_s30, %s699_s4 }
  0x2e   :  { %p526_p7 = pnand %p524_p6, %p521_p5 }
  0x30   :  { %529 = shalt.err (!%p526_p7)
}
  0x31   :  { %s530_s10 = scalar_lea.vmem %s50_s27, 512  ;;  %p535_p9 = scmp.lt.s32.totalorder %s50_s27, %s50_s27 }
  0x32   :  { %p531_p8 = scmp.ne.s32.totalorder %s50_s27, %s530_s10  ;;  %p536_p10 = scmp.lt.s32.totalorder %s530_s10, %s530_s10 }
  0x34   :  { %p537_p11 = por %p536_p10, %p535_p9 }
  0x36   :  { %p538_p12 = pnand %p537_p11, %p531_p8 }
  0x38   :  { %541 = shalt.err (!%p538_p12)
}
  0x39   :  { %s576_s1 = smov 128   ;;  %s577_s21 = smov 8  }
  0x3a   :  { %55 = dma.hbm_to_vmem [thread:$0]  %s699_s4, 512, %s50_s27, [#allocation8], %s576_s1, %s576_s1, %s577_s21  }
  0x3b   :  { %564 = dma.done.wait [#allocation5], 16  }
  0x3c   :  { %565 = vsyncadd [#allocation5], 4294967280 }
  0x3d   :  { %566 = dma.done.wait [#allocation3], 128  }
  0x3e   :  { %567 = vsyncadd [#allocation3], 4294967168 }
  0x3f   :  { %568 = dma.done.wait [#allocation8], 640  }
  0x40   :  { %569 = vsyncadd [#allocation8], 4294966656 }
  0x41   :  { %68 = sfence }
  0x42   :  { %v72_v0 = vld [vmem:[#allocation9] sm:$0xff]  ;;  %v73_v1 = vld [vmem:[#allocation9 + $0x8] sm:$0xff]  ;;  %v74_v2 = vld [vmem:[#allocation9 + $0x10] sm:$0xff]  ;;  %v578_v3 = vmov 0.0|0.0   ;;  %vm579_vm0 = vmmov 0   ;;  %v580_v6 = vmov 0.0  }
  0x43   :  { %419 = vmatprep.subr.bf16.mxu0 %v578_v3  ;;  %v420_v4 = vpack.c.bf16 %v73_v1, %v72_v0  ;;  %v75_v5 = vld [vmem:[#allocation9 + $0x18] sm:$0xff]  ;;  %425 = vmatprep.subr.bf16.mxu1 %v578_v3  ;;  %v665_v8 = vld [vmem:[#allocation6] sm:$0xff]  ;;  %v670_v9 = vld [vmem:[%s698_s3] sm:$0xff]  ;;  %vm77_vm1 = vcmask 261120   ;;  %v581_v13 = vmov 0   ;;  %v582_v14 = vmov 2  }
  0x44   :  { %394 = vmatprep.mubr.msk.f32.mxu0 %vm579_vm0, %v580_v6  ;;  %405 = vmatprep.mubr.msk.f32.mxu1 %vm579_vm0, %v580_v6  ;;  %v423_v7 = vpack.c.bf16 %v75_v5, %v74_v2  ;;  %v70_v10 = vld [vmem:[#allocation7] sm:$0xff]  ;;  %v76_v11 = vadd.f32 %v670_v9, %v665_v8  ;;  %s151_s3 = sld [smem:[#allocation2]]  ;;  %s366_s14 = sld [smem:[#allocation2 + $0x1]]  ;;  %v583_v38 = vmov 1  }
  0x45   :  { %421 = vmatpush3.bf16.msra.mxu0 %v420_v4  ;;  %427 = vmatpush3.bf16.msra.mxu1 %v420_v4  ;;  %v160_v12 = vadd.f32 %v670_v9, %v70_v10  ;;  %s369_s15 = sld [smem:[#allocation2 + $0x2]]  ;;  %s584_s16 = smov [#allocation10]  }
  0x46   :  { %422 = vmatprep.subr.bf16.mxu0 %v578_v3  ;;  %428 = vmatprep.subr.bf16.mxu1 %v578_v3  ;;  %s352_s2 = sshll.u32 %s584_s16, 4  ;;  %s353_s2 = int_to_ptr.vmem [resolvable:$true] %s352_s2 }
  0x47   :  { %450 = vset.pattern.permute.xlu0 %v581_v13  ;;  %452 = vset.pattern.permute.xlu1 %v582_v14  ;;  %s542_s17 = scalar_lea.vmem %s353_s2, 128  ;;  %p547_p0 = scmp.lt.s32.totalorder %s353_s2, %s353_s2 }
  0x48   :  { %p543_p13 = scmp.ne.s32.totalorder %s353_s2, %s542_s17  ;;  %p548_p1 = scmp.lt.s32.totalorder %s542_s17, %s542_s17 }
  0x49   :  { %424 = vmatpush3.bf16.msra.mxu0 %v423_v7  ;;  %430 = vmatpush3.bf16.msra.mxu1 %v423_v7 }
  0x4a   :  { %431 = vmatprep.subr.bf16.mxu0 %v578_v3  ;;  %v152_v15 = vstv %s151_s3  ;;  %v235_v16 = vstv %s366_s14  ;;  %p549_p2 = por %p548_p1, %p547_p0 }
  0x4b   :  { %v317_v25 = vstv %s369_s15 }
  0x4c   :  { %395 = vmatmul.mubr.msk.f32.vlgmr.msra.gmra.mrb[0].mxu0 %vm77_vm1, %v76_v11  ;;  %406 = vmatmul.mubr.msk.f32.vlgmr.msra.gmra.mrb[0].mxu1 %vm77_vm1, %v160_v12  ;;  %p550_p3 = pnand %p549_p2, %p543_p13 }
  0x4d   :  { %433 = vmatpush3.bf16.msra.mxu0 %v420_v4  ;;  %416 = vmatprep.mubr.msk.f32.mxu0 %vm579_vm0, %v580_v6 }
  0x4e   :  { %434 = vmatprep.subr.bf16.mxu0 %v578_v3 }
  0x51   :  { %436 = vmatpush3.bf16.msra.mxu0 %v423_v7 }
  0x54   :  { %417 = vmatmul.mubr.msk.f32.vlgmr.msra.gmra.mrb[2].mxu0 %vm77_vm1, %v670_v9 }
 0x11f   :  { %v147_v17 = vpop.f32.mrb[0].mxu0  ;;  %v230_v18 = vpop.f32.mrb[0].mxu1 }
 0x120   :  { %v153_v19 = vadd.f32 %v152_v15, %v147_v17  ;;  %v396_v20 = vpop.f32.mrb[1].mxu0  ;;  %v236_v21 = vadd.f32 %v235_v16, %v230_v18  ;;  %v407_v22 = vpop.f32.mrb[1].mxu1 }
 0x122   :  { %v364_v23 = vmul.f32 -1.442695, %v153_v19  ;;  %v367_v24 = vmul.f32 -1.442695, %v236_v21 }
 0x124   :  { %454 = vpow2.f32 %v364_v23 }
 0x125   :  { %456 = vpow2.f32 %v367_v24 }
 0x127   :  { %v312_v26 = vpop.f32.mrb[2].mxu0 }
 0x128   :  { %v318_v27 = vadd.f32 %v317_v25, %v312_v26  ;;  %v418_v28 = vpop.f32.mrb[3].mxu0 }
 0x12a   :  { %v370_v29 = vmul.f32 -1.442695, %v318_v27 }
 0x12c   :  { %458 = vpow2.f32 %v370_v29 }
 0x12e   :  { %v455_v30 = vpop.eup %454 }
 0x12f   :  { %v457_v31 = vpop.eup %456  ;;  %v157_v32 = vadd.f32 1.0, %v455_v30 }
 0x130   :  { %v240_v33 = vadd.f32 1.0, %v457_v31 }
 0x131   :  { %460 = vrcp.f32 %v157_v32 }
 0x132   :  { %462 = vrcp.f32 %v240_v33 }
 0x136   :  { %v459_v34 = vpop.eup %458 }
 0x137   :  { %v322_v35 = vadd.f32 1.0, %v459_v34 }
 0x139   :  { %464 = vrcp.f32 %v322_v35 }
 0x13b   :  { %v461_v36 = vpop.eup %460 }
 0x13c   :  { %327 = vperm.xlu0 %450, %v461_v36   ;;  %v463_v37 = vpop.eup %462 }
 0x140   :  { %451 = vset.pattern.permute.xlu0 %v583_v38 }
 0x141   :  { %333 = vperm.xlu0 %451, %v463_v37  }
 0x143   :  { %v465_v39 = vpop.eup %464 }
 0x144   :  { %340 = vperm.xlu1 %452, %v465_v39  }
 0x145   :  { %453 = vset.pattern.permute.xlu0 %v582_v14 }
 0x1bb   :  { %v328_v40 = vpop.permute.xlu0 %327 }
 0x1bc   :  { %v330_v42 = vmul.f32 %v328_v40, %v665_v8 }
 0x1c0   :  { %v334_v41 = vpop.permute.xlu0 %333 }
 0x1c1   :  { %v336_v43 = vmul.f32 %v334_v41, %v70_v10 }
 0x1c3   :  { %v337_v44 = vadd.f32 %v336_v43, %v330_v42  ;;  %v341_v45 = vpop.permute.xlu1 %340 }
 0x1c4   :  { %v343_v46 = vmul.f32 %v341_v45, %v670_v9 }
 0x1c6   :  { %v344_v47 = vadd.f32 %v343_v46, %v337_v44 }
 0x1c8   :  { %345 = vst.msk [vmem:[#allocation10] sm:$0xff] %vm77_vm1, %v344_v47 }
 0x1c9   :  { %553 = shalt.err (!%p550_p3)
}
 0x1ca   :  { %s554_s20 = scalar_lea.hbm %s700_s5, 128 }
 0x1cb   :  { %p555_p4 = scmp.ne.s32.totalorder %s700_s5, %s554_s20  ;;  %p558_p5 = scmp.lt.u32.totalorder %s554_s20, %s700_s5 }
 0x1cd   :  { %p560_p6 = pnand %p558_p5, %p555_p4 }
 0x1cf   :  { %563 = shalt.err (!%p560_p6)
}
 0x1d0   :  { %355 = dma.vmem_to_hbm [thread:$0]  %s353_s2, 128, %s700_s5, [#allocation4]  }
 0x1d1   :  { %570 = dma.done.wait [#allocation4], 128  }
 0x1d2   :  { %571 = vsyncadd [#allocation4], 4294967168 }
 0x1d3   :  { %359 = vsyncpa [#allocation3], 1 }
 0x1d4   :  { %360 = vsyncpa [#allocation8], 1 }
 0x1d5   :  { %361 = vsyncpa [#allocation4], 1 }
 0x1d6   :  { %362 = vsyncpa [#allocation5], 1 }

</bundles_post_ra>
